<compile_context>
chip_gen: v5e
topology: v5e:2x2
jax: 0.10.0
libtpu: 0.0.40
codegen_flags: <defaults>
</compile_context>

<pallas_src>
import functools

import jax
import jax.numpy as jnp
from jax.experimental import pallas as pl
from jax.experimental.pallas import tpu as pltpu


# ----------------------------- Pallas kernels ------------------------------

def _linear_kernel(x_ref, w_ref, b_ref, o_ref):
    # x: (TM, K), w: (TN, K) (PyTorch (out, in) convention), b: (1, TN)
    # Contract the shared K axis directly (no w.T / XLU transpose); accumulate
    # in f32 via preferred_element_type, operands stay in their native dtype.
    y = jax.lax.dot_general(x_ref[...], w_ref[...], (((1,), (1,)), ((), ())),
                            preferred_element_type=jnp.float32)
    o_ref[...] = (y + b_ref[...]).astype(o_ref.dtype)


def _linear_ln_kernel(x_ref, w_ref, b_ref, g_ref, bb_ref, o_ref, *, eps):
    # Fused: y = LayerNorm(x @ w.T + b) * gamma + beta   (per (TM, Nout) tile)
    y = jax.lax.dot_general(x_ref[...], w_ref[...], (((1,), (1,)), ((), ())),
                            preferred_element_type=jnp.float32)
    y = y + b_ref[...]
    mu = jnp.mean(y, axis=-1, keepdims=True)
    var = jnp.mean((y - mu) ** 2, axis=-1, keepdims=True)
    yn = (y - mu) * jax.lax.rsqrt(var + eps)
    o_ref[...] = (yn * g_ref[...] + bb_ref[...]).astype(o_ref.dtype)


def _fused_attn_kernel(x_ref, kv_ref, wq_ref, bq_ref, wp_ref, bp_ref, o_ref,
                       *, heads, scale):
    # x:  (TQ, C)      -- raw input tile (q projection fused in prologue)
    # kv: (Nk, 2C)     -- k = cols [0, C), v = cols [C, 2C)
    # wq/wp: (C, C)    -- PyTorch (out, in) convention, VMEM-resident
    # bq/bp: (1, C)
    # o:  (TQ, C)      -- out projection fused in epilogue, single store
    TQ, C = x_ref.shape
    D = C // heads

    # q = (x @ wq.T + bq) * scale   (scale commutes into the scores)
    q = jax.lax.dot_general(x_ref[...], wq_ref[...], (((1,), (1,)), ((), ())),
                            preferred_element_type=jnp.float32)
    q = (q + bq_ref[...]) * scale

    kv = kv_ref[...]
    wp = wp_ref[...]

    acc = jnp.zeros((TQ, C), jnp.float32)
    for hh in range(heads):
        qh = q[:, hh * D:(hh + 1) * D]                       # (TQ, D)
        kh = kv[:, hh * D:(hh + 1) * D]                      # (Nk, D)
        vh = kv[:, C + hh * D:C + (hh + 1) * D]              # (Nk, D)

        # scores: contract D directly (no k.T)
        s = jax.lax.dot_general(qh.astype(kh.dtype), kh,
                                (((1,), (1,)), ((), ())),
                                preferred_element_type=jnp.float32)  # (TQ, Nk)
        m = jnp.max(s, axis=-1, keepdims=True)
        p = jnp.exp(s - m)
        denom = jnp.sum(p, axis=-1, keepdims=True)
        oh = jnp.dot(p.astype(vh.dtype), vh,
                     preferred_element_type=jnp.float32)             # (TQ, D)
        oh = oh / denom                                              # exact

        # fused output projection: contract this head's D against the matching
        # (C, D) column slice of wproj and accumulate (no concatenate).
        wph = wp[:, hh * D:(hh + 1) * D]                             # (C, D)
        acc = acc + jax.lax.dot_general(oh.astype(wph.dtype), wph,
                                        (((1,), (1,)), ((), ())),
                                        preferred_element_type=jnp.float32)

    o_ref[...] = (acc + bp_ref[...]).astype(o_ref.dtype)


# ------------------------------ Pallas wrappers -----------------------------

def linear(x, w, b, *, block_m=1024, block_n=512):
    """y = x @ w.T + b   (x: (M, K), w: (Nout, K), b: (Nout,)).

    Tiled over (M, Nout) with a 2-D parallel grid so that even small-M layers
    (e.g. the kv projection after spatial reduction) expose enough grid steps
    for both v7x TensorCores; weights/bias stay VMEM-resident per column tile.
    """
    M, K = x.shape
    n_out = w.shape[0]
    tm = min(block_m, M)
    tn = min(block_n, n_out)
    return pl.pallas_call(
        _linear_kernel,
        out_shape=jax.ShapeDtypeStruct((M, n_out), x.dtype),
        grid=(pl.cdiv(M, tm), pl.cdiv(n_out, tn)),
        in_specs=[
            pl.BlockSpec((tm, K), lambda i, j: (i, 0)),
            pl.BlockSpec((tn, K), lambda i, j: (j, 0)),
            pl.BlockSpec((1, tn), lambda i, j: (0, j)),
        ],
        out_specs=pl.BlockSpec((tm, tn), lambda i, j: (i, j)),
        compiler_params=pltpu.CompilerParams(
            dimension_semantics=("parallel", "parallel")),
    )(x, w, b.reshape(1, n_out))


def linear_layernorm(x, w, b, gamma, beta, *, eps=1e-5, block_m=1024):
    """Fused (x @ w.T + b) -> LayerNorm(gamma, beta), tiled over M only
    (the norm needs the full Nout row)."""
    M, K = x.shape
    n_out = w.shape[0]
    tm = min(block_m, M)
    return pl.pallas_call(
        functools.partial(_linear_ln_kernel, eps=eps),
        out_shape=jax.ShapeDtypeStruct((M, n_out), x.dtype),
        grid=(pl.cdiv(M, tm),),
        in_specs=[
            pl.BlockSpec((tm, K), lambda i: (i, 0)),
            pl.BlockSpec((n_out, K), lambda i: (0, 0)),
            pl.BlockSpec((1, n_out), lambda i: (0, 0)),
            pl.BlockSpec((1, n_out), lambda i: (0, 0)),
            pl.BlockSpec((1, n_out), lambda i: (0, 0)),
        ],
        out_specs=pl.BlockSpec((tm, n_out), lambda i: (i, 0)),
        compiler_params=pltpu.CompilerParams(
            dimension_semantics=("parallel",)),
    )(x, w, b.reshape(1, n_out), gamma.reshape(1, n_out), beta.reshape(1, n_out))


def fused_attention(x, kv, wq, bq, wproj, bproj, heads, scale, *, block_q=512):
    """x: (B, N, C) raw input; kv: (B, Nk, 2C).  Returns proj(attn(q(x), kv)).

    q projection and output projection are fused into the kernel; heads are
    contiguous D-wide channel slices handled in-kernel (lane-dense layout,
    no HBM transposes, single full-width store per tile).
    """
    B, N, C = x.shape
    Nk = kv.shape[1]
    tq = min(block_q, N)
    kern = functools.partial(_fused_attn_kernel, heads=heads, scale=float(scale))
    return pl.pallas_call(
        kern,
        out_shape=jax.ShapeDtypeStruct((B, N, C), x.dtype),
        grid=(B, pl.cdiv(N, tq)),
        in_specs=[
            pl.BlockSpec((None, tq, C), lambda b, i: (b, i, 0)),
            pl.BlockSpec((None, Nk, 2 * C), lambda b, i: (b, 0, 0)),
            pl.BlockSpec((C, C), lambda b, i: (0, 0)),       # wq resident
            pl.BlockSpec((1, C), lambda b, i: (0, 0)),       # bq
            pl.BlockSpec((C, C), lambda b, i: (0, 0)),       # wproj resident
            pl.BlockSpec((1, C), lambda b, i: (0, 0)),       # bproj
        ],
        out_specs=pl.BlockSpec((None, tq, C), lambda b, i: (b, i, 0)),
        compiler_params=pltpu.CompilerParams(
            dimension_semantics=("parallel", "parallel")),
    )(x, kv, wq, bq.reshape(1, C), wproj, bproj.reshape(1, C))


# ------------------------------ Module wrapper ------------------------------

class Attention:
    def __init__(self, dim, head, sr_ratio, key):
        self.dim = dim
        self.head = head
        self.sr_ratio = sr_ratio
        self.scale = (dim // head) ** (-0.5)

        ks = jax.random.split(key, 8)
        init = lambda k, shape: (0.02 * jax.random.normal(k, shape)).astype(jnp.float32)

        self.wq = init(ks[0], (dim, dim))
        self.bq = init(ks[1], (dim,))
        self.wkv = init(ks[2], (2 * dim, dim))
        self.bkv = init(ks[3], (2 * dim,))
        self.wproj = init(ks[4], (dim, dim))
        self.bproj = init(ks[5], (dim,))
        if sr_ratio > 1:
            # Conv2d(dim, dim, kernel=sr, stride=sr): weight (oc, ic, kh, kw)
            self.w_sr = init(ks[6], (dim, dim, sr_ratio, sr_ratio))
            self.b_sr = init(ks[7], (dim,))
            # pre-flatten once on the host to (oc, kh*kw*ic) matching the
            # (kh, kw, ic) patch flatten order used below — no in-kernel transpose.
            self.w_sr_flat = self.w_sr.transpose(0, 2, 3, 1).reshape(
                dim, sr_ratio * sr_ratio * dim)
            self.gamma = jnp.ones((dim,), jnp.float32)
            self.beta = jnp.zeros((dim,), jnp.float32)

    def __call__(self, x, h, w):
        b, n, c = x.shape

        # spatial reduction of key/value sequence (conv == non-overlapping
        # patch matmul), fused with its LayerNorm in a single kernel.
        if self.sr_ratio > 1:
            sr = self.sr_ratio
            xp = x.reshape(b, h // sr, sr, w // sr, sr, c)
            xp = xp.transpose(0, 1, 3, 2, 4, 5)               # (b, h', w', sr, sr, c)
            nk = (h // sr) * (w // sr)
            xp = xp.reshape(b * nk, sr * sr * c)              # patch order (kh, kw, ic)
            xr = linear_layernorm(xp, self.w_sr_flat, self.b_sr, self.gamma, self.beta)
            xr = xr.reshape(b, nk, c)
        else:
            xr = x
            nk = n

        # kv projection — kept in (b, nk, 2c); k = cols [0,c), v = cols [c,2c)
        kv = linear(xr.reshape(b * nk, c), self.wkv, self.bkv).reshape(b, nk, 2 * c)

        # q projection + multi-head softmax attention + output projection,
        # all fused into one kernel (no (b, n, c) HBM round-trips in between).
        out = fused_attention(x, kv, self.wq, self.bq, self.wproj, self.bproj,
                              self.head, self.scale)          # (b, n, c)
        return out


# --------------------------- plain-JAX reference ----------------------------

def reference_forward(mod: Attention, x, h, w):
    b, n, c = x.shape
    hd, d = mod.head, c // mod.head
    q = (x @ mod.wq.T + mod.bq).reshape(b, n, hd, d).transpose(0, 2, 1, 3)
    if mod.sr_ratio > 1:
        sr = mod.sr_ratio
        xi = x.transpose(0, 2, 1).reshape(b, c, h, w)         # NCHW, like torch
        xo = jax.lax.conv_general_dilated(
            xi, mod.w_sr, window_strides=(sr, sr), padding="VALID",
            dimension_numbers=("NCHW", "OIHW", "NCHW"))
        xo = xo + mod.b_sr.reshape(1, c, 1, 1)
        xr = xo.reshape(b, c, -1).transpose(0, 2, 1)
        mu = xr.mean(-1, keepdims=True)
        var = ((xr - mu) ** 2).mean(-1, keepdims=True)
        xr = (xr - mu) * jax.lax.rsqrt(var + 1e-5) * mod.gamma + mod.beta
    else:
        xr = x
    kv = (xr @ mod.wkv.T + mod.bkv).reshape(b, -1, 2, hd, d).transpose(2, 0, 3, 1, 4)
    k_, v_ = kv[0], kv[1]
    attn = jnp.einsum("bhqd,bhkd->bhqk", q, k_) * mod.scale
    attn = jax.nn.softmax(attn, axis=-1)
    o = jnp.einsum("bhqk,bhkd->bhqd", attn, v_).transpose(0, 2, 1, 3).reshape(b, n, c)
    return o @ mod.wproj.T + mod.bproj


# ----------------------------------- main -----------------------------------

if __name__ == "__main__":
    key = jax.random.PRNGKey(0)
    k_param, k_param2, k_x = jax.random.split(key, 3)

    dim, head = 32, 2
    b, h, w = 2, 16, 16
    n = h * w
    x = jax.random.normal(k_x, (b, n, dim), dtype=jnp.float32)

    # sr_ratio > 1 path (conv + LayerNorm spatial reduction)
    mod = Attention(dim, head, sr_ratio=2, key=k_param)
    out = jax.block_until_ready(mod(x, h, w))
    ref = jax.block_until_ready(reference_forward(mod, x, h, w))
    assert out.shape == (b, n, dim)
    assert jnp.allclose(out, ref, atol=1e-3, rtol=1e-3), float(jnp.max(jnp.abs(out - ref)))

    # sr_ratio == 1 path (no spatial reduction)
    mod1 = Attention(dim, head, sr_ratio=1, key=k_param2)
    out1 = jax.block_until_ready(mod1(x, h, w))
    ref1 = jax.block_until_ready(reference_forward(mod1, x, h, w))
    assert out1.shape == (b, n, dim)
    assert jnp.allclose(out1, ref1, atol=1e-3, rtol=1e-3), float(jnp.max(jnp.abs(out1 - ref1)))

    print("KERNEL_OK")
</pallas_src>

<mosaic_0001>
module attributes {stable_mosaic.version = 11 : i64} {
  func.func @_linear_ln_kernel(%arg0: i32, %arg1: memref<128x128xf32, #tpu.memory_space<vmem>>, %arg2: memref<32x128xf32, #tpu.memory_space<vmem>>, %arg3: memref<1x32xf32, #tpu.memory_space<vmem>>, %arg4: memref<1x32xf32, #tpu.memory_space<vmem>>, %arg5: memref<1x32xf32, #tpu.memory_space<vmem>>, %arg6: memref<128x32xf32, #tpu.memory_space<vmem>>) attributes {dimension_semantics = [#tpu.dimension_semantics<parallel>], iteration_bounds = array<i64: 1>, scalar_prefetch = 0 : i64, scratch_operands = 0 : i64, tpu.core_type = #tpu.core_type<tc>, window_params = [{transform_indices = @transform_0, window_bounds = array<i64: 128, 128>}, {pipeline_mode = #tpu.pipeline_mode<synchronous>, transform_indices = @transform_1, window_bounds = array<i64: 32, 128>}, {pipeline_mode = #tpu.pipeline_mode<synchronous>, transform_indices = @transform_2, window_bounds = array<i64: 1, 32>}, {pipeline_mode = #tpu.pipeline_mode<synchronous>, transform_indices = @transform_3, window_bounds = array<i64: 1, 32>}, {pipeline_mode = #tpu.pipeline_mode<synchronous>, transform_indices = @transform_4, window_bounds = array<i64: 1, 32>}, {transform_indices = @transform_5, window_bounds = array<i64: 128, 32>}]} {
    %c0 = arith.constant 0 : index
    %c0_0 = arith.constant 0 : index
    %0 = vector.load %arg1[%c0, %c0_0] : memref<128x128xf32, #tpu.memory_space<vmem>>, vector<128x128xf32>
    %c0_1 = arith.constant 0 : index
    %c0_2 = arith.constant 0 : index
    %1 = vector.load %arg2[%c0_1, %c0_2] : memref<32x128xf32, #tpu.memory_space<vmem>>, vector<32x128xf32>
    %cst = arith.constant dense<0.000000e+00> : vector<128x32xf32>
    %2 = tpu.matmul %0, %1, %cst {dimension_numbers = #tpu.dot_dimension_numbers<[1], [1], [0], [0], [0, 0, 1, 0], [], []>} : vector<128x128xf32>, vector<32x128xf32>, vector<128x32xf32> -> vector<128x32xf32>
    %c0_3 = arith.constant 0 : index
    %c0_4 = arith.constant 0 : index
    %3 = vector.load %arg3[%c0_3, %c0_4] : memref<1x32xf32, #tpu.memory_space<vmem>>, vector<1x32xf32>
    %4 = vector.broadcast %3 : vector<1x32xf32> to vector<128x32xf32>
    %5 = arith.addf %2, %4 : vector<128x32xf32>
    %cst_5 = arith.constant dense<0.000000e+00> : vector<128xf32>
    %6 = vector.multi_reduction <add>, %5, %cst_5 [1] : vector<128x32xf32> to vector<128xf32>
    %7 = vector.shape_cast %6 : vector<128xf32> to vector<128x1xf32>
    %cst_6 = arith.constant 3.200000e+01 : f32
    %8 = vector.broadcast %cst_6 : f32 to vector<128x1xf32>
    %9 = arith.divf %7, %8 : vector<128x1xf32>
    %10 = vector.broadcast %9 : vector<128x1xf32> to vector<128x32xf32>
    %11 = arith.subf %5, %10 : vector<128x32xf32>
    %12 = arith.mulf %11, %11 : vector<128x32xf32>
    %cst_7 = arith.constant dense<0.000000e+00> : vector<128xf32>
    %13 = vector.multi_reduction <add>, %12, %cst_7 [1] : vector<128x32xf32> to vector<128xf32>
    %14 = vector.shape_cast %13 : vector<128xf32> to vector<128x1xf32>
    %cst_8 = arith.constant 3.200000e+01 : f32
    %15 = vector.broadcast %cst_8 : f32 to vector<128x1xf32>
    %16 = arith.divf %14, %15 : vector<128x1xf32>
    %17 = vector.broadcast %9 : vector<128x1xf32> to vector<128x32xf32>
    %18 = arith.subf %5, %17 : vector<128x32xf32>
    %cst_9 = arith.constant 9.99999974E-6 : f32
    %19 = vector.broadcast %cst_9 : f32 to vector<128x1xf32>
    %20 = arith.addf %16, %19 : vector<128x1xf32>
    %21 = math.rsqrt %20 : vector<128x1xf32>
    %22 = vector.broadcast %21 : vector<128x1xf32> to vector<128x32xf32>
    %23 = arith.mulf %18, %22 : vector<128x32xf32>
    %c0_10 = arith.constant 0 : index
    %c0_11 = arith.constant 0 : index
    %24 = vector.load %arg4[%c0_10, %c0_11] : memref<1x32xf32, #tpu.memory_space<vmem>>, vector<1x32xf32>
    %25 = vector.broadcast %24 : vector<1x32xf32> to vector<128x32xf32>
    %26 = arith.mulf %23, %25 : vector<128x32xf32>
    %c0_12 = arith.constant 0 : index
    %c0_13 = arith.constant 0 : index
    %27 = vector.load %arg5[%c0_12, %c0_13] : memref<1x32xf32, #tpu.memory_space<vmem>>, vector<1x32xf32>
    %28 = vector.broadcast %27 : vector<1x32xf32> to vector<128x32xf32>
    %29 = arith.addf %26, %28 : vector<128x32xf32>
    %c0_14 = arith.constant 0 : index
    %c0_15 = arith.constant 0 : index
    %30 = vector.load %arg6[%c0_14, %c0_15] : memref<128x32xf32, #tpu.memory_space<vmem>>, vector<128x32xf32>
    tpu.vector_store %arg6[%c0_14, %c0_15], %29 {strides = array<i32>} : memref<128x32xf32, #tpu.memory_space<vmem>>, vector<128x32xf32>,
    return
  }
  func.func @transform_0(%arg0: i32) -> (i32, i32) {
    %c0_i32 = arith.constant 0 : i32
    %c0_i32_0 = arith.constant 0 : i32
    return %arg0, %c0_i32 : i32, i32
  }
  func.func @transform_1(%arg0: i32) -> (i32, i32) {
    %c0_i32 = arith.constant 0 : i32
    %c0_i32_0 = arith.constant 0 : i32
    %c0_i32_1 = arith.constant 0 : i32
    return %c0_i32, %c0_i32_0 : i32, i32
  }
  func.func @transform_2(%arg0: i32) -> (i32, i32) {
    %c0_i32 = arith.constant 0 : i32
    %c0_i32_0 = arith.constant 0 : i32
    %c0_i32_1 = arith.constant 0 : i32
    return %c0_i32, %c0_i32_0 : i32, i32
  }
  func.func @transform_3(%arg0: i32) -> (i32, i32) {
    %c0_i32 = arith.constant 0 : i32
    %c0_i32_0 = arith.constant 0 : i32
    %c0_i32_1 = arith.constant 0 : i32
    return %c0_i32, %c0_i32_0 : i32, i32
  }
  func.func @transform_4(%arg0: i32) -> (i32, i32) {
    %c0_i32 = arith.constant 0 : i32
    %c0_i32_0 = arith.constant 0 : i32
    %c0_i32_1 = arith.constant 0 : i32
    return %c0_i32, %c0_i32_0 : i32, i32
  }
  func.func @transform_5(%arg0: i32) -> (i32, i32) {
    %c0_i32 = arith.constant 0 : i32
    %c0_i32_0 = arith.constant 0 : i32
    return %arg0, %c0_i32 : i32, i32
  }
}

</mosaic_0001>

<bundles_post_ra>
// kernel: tpu_custom_call.1
= control target key start
LH: loop header
LB: loop body
LE: loop exit
PB: predicated region body
PF: predicated region fallthrough
CT: control target
= control target key end

     0   :  { %10 = vsyncpa [#allocation3], 0  ;;  %s1137_s0 = inlined_call_operand.hbm [shape: f32[128,128], index: 0, kind: input, shape index: {}]   ;;  %s1138_s1 = inlined_call_operand.hbm [shape: f32[32,128], index: 1, kind: input, shape index: {}]   ;;  %s1139_s2 = inlined_call_operand.vmem [shape: f32[1,32], index: 2, kind: input, shape index: {}]   ;;  %s1140_s3 = inlined_call_operand.vmem [shape: f32[1,32], index: 3, kind: input, shape index: {}]   ;;  %s1141_s4 = inlined_call_operand.vmem [shape: f32[1,32], index: 4, kind: input, shape index: {}]   ;;  %s1142_s5 = inlined_call_operand.vmem [shape: f32[128,32], index: 5, kind: output, shape index: {}]  }
   0x1   :  { %s16_s20 = sshll.u32 %s1137_s0, 4  ;;  %s17_s20 = int_to_ptr.hbm [resolvable:$true] %s16_s20 }
   0x2   :  { %11 = vsyncpa [#allocation5], 0  ;;  %s669_s21 = smov [#allocation2]   ;;  %s29_s25 = sshll.u32 %s1138_s1, 4  ;;  %s30_s25 = int_to_ptr.hbm [resolvable:$true] %s29_s25 }
   0x3   :  { %s18_s22 = sshll.u32 %s669_s21, 4  ;;  %s670_s26 = smov 128   ;;  %s19_s22 = int_to_ptr.vmem [resolvable:$true] %s18_s22 }
   0x4   :  { %s671_s27 = smov 8   ;;  %s672_s28 = smov [#allocation4]  }
   0x5   :  { %24 = dma.hbm_to_vmem [thread:$0]  %s17_s20, 2048, %s19_s22, [#allocation3], %s670_s26, %s670_s26, %s671_s27  }
   0x6   :  { %s31_s29 = sshll.u32 %s672_s28, 4  ;;  %s32_s29 = int_to_ptr.vmem [resolvable:$true] %s31_s29 }
   0x7   :  { %37 = dma.hbm_to_vmem [thread:$0]  %s30_s25, 512, %s32_s29, [#allocation5], %s670_s26, %s670_s26, %s671_s27  }
   0x8   :  { %665 = dma.done.wait [#allocation3], 2048  }
   0x9   :  { %666 = vsyncadd [#allocation3], 4294965248 }
   0xa   :  { %667 = dma.done.wait [#allocation5], 512  }
   0xb   :  { %668 = vsyncadd [#allocation5], 4294966784  ;;  %v71_v0 = vld [vmem:[#allocation4 + $0x18] sm:$0xff]  ;;  %v70_v1 = vld [vmem:[#allocation4 + $0x10] sm:$0xff]  ;;  %vm141_vm0 = vcmask 261120  }
   0xc   :  { %88 = vmatpush.xpose.msra.mxu0 %v71_v0  ;;  %563 = vmatpush.xpose.msra.mxu1 %v71_v0  ;;  %v69_v2 = vld [vmem:[#allocation4 + $0x8] sm:$0xff]  ;;  %v68_v3 = vld [vmem:[#allocation4] sm:$0xff]  ;;  %v54_v12 = vld [vmem:[#allocation2 + $0x10] sm:$0xff] }
   0xd   :  { %564 = vmatpush.xpose.msra.mxu2 %v71_v0  ;;  %565 = vmatpush.xpose.msra.mxu3 %v71_v0  ;;  %v52_v4 = vld [vmem:[#allocation2] sm:$0xff]  ;;  %v53_v8 = vld [vmem:[#allocation2 + $0x8] sm:$0xff]  ;;  %v58_v13 = vld [vmem:[#allocation2 + $0x30] sm:$0xff] }
   0xe   :  { %v56_v5 = vld [vmem:[#allocation2 + $0x20] sm:$0xff]  ;;  %v57_v9 = vld [vmem:[#allocation2 + $0x28] sm:$0xff]  ;;  %v62_v14 = vld [vmem:[#allocation2 + $0x50] sm:$0xff] }
   0xf   :  { %v60_v6 = vld [vmem:[#allocation2 + $0x40] sm:$0xff]  ;;  %v61_v10 = vld [vmem:[#allocation2 + $0x48] sm:$0xff]  ;;  %v66_v15 = vld [vmem:[#allocation2 + $0x70] sm:$0xff] }
  0x10   :  { %89 = vmatpush.xpose.msra.mxu0 %v70_v1  ;;  %566 = vmatpush.xpose.msra.mxu1 %v70_v1  ;;  %v64_v7 = vld [vmem:[#allocation2 + $0x60] sm:$0xff]  ;;  %v65_v11 = vld [vmem:[#allocation2 + $0x68] sm:$0xff]  ;;  %v55_v16 = vld [vmem:[#allocation2 + $0x18] sm:$0xff] }
  0x11   :  { %567 = vmatpush.xpose.msra.mxu2 %v70_v1  ;;  %568 = vmatpush.xpose.msra.mxu3 %v70_v1  ;;  %v59_v17 = vld [vmem:[#allocation2 + $0x38] sm:$0xff]  ;;  %v713_v20 = vld [vmem:[%s1139_s2] ss:$0 sm:$0xff] }
  0x12   :  { %v63_v18 = vld [vmem:[#allocation2 + $0x58] sm:$0xff] }
  0x13   :  { %v67_v19 = vld [vmem:[#allocation2 + $0x78] sm:$0xff] }
  0x14   :  { %90 = vmatpush.xpose.msra.mxu0 %v69_v2  ;;  %569 = vmatpush.xpose.msra.mxu1 %v69_v2 }
  0x15   :  { %570 = vmatpush.xpose.msra.mxu2 %v69_v2  ;;  %571 = vmatpush.xpose.msra.mxu3 %v69_v2 }
  0x18   :  { %91 = vmatpush.xpose.msra.mxu0 %v68_v3  ;;  %572 = vmatpush.xpose.msra.mxu1 %v68_v3 }
  0x19   :  { %573 = vmatpush.xpose.msra.mxu2 %v68_v3  ;;  %574 = vmatpush.xpose.msra.mxu3 %v68_v3 }
  0x1b   :  { %92 = vmatmul.f32.vlgmr.msra.gmra.mxu0 %v52_v4  ;;  %104 = vmatmul.f32.vlgmr.msra.gmra.mxu1 %v56_v5  ;;  %v673_v5 = vmov 32.0  }
  0x1c   :  { %116 = vmatmul.f32.vlgmr.msra.gmra.mxu2 %v60_v6  ;;  %128 = vmatmul.f32.vlgmr.msra.gmra.mxu3 %v64_v7  ;;  %583 = vrcp.f32 %v673_v5 }
  0x22   :  { %v584_v6 = vpop.eup %583 }
  0x23   :  { %95 = vmatmul.f32.gmra.mxu0 %v53_v8  ;;  %107 = vmatmul.f32.gmra.mxu1 %v57_v9  ;;  %v191_v7 = vmul.f32 32.0, %v584_v6  ;;  %vm195_vm1 = vweird.f32 %v584_v6 }
  0x24   :  { %119 = vmatmul.f32.gmra.mxu2 %v61_v10  ;;  %131 = vmatmul.f32.gmra.mxu3 %v65_v11 }
  0x25   :  { %v192_v8 = vsub.f32 1.0, %v191_v7 }
  0x27   :  { %v193_v9 = vmul.f32 %v584_v6, %v192_v8 }
  0x29   :  { %v194_v10 = vadd.f32 %v584_v6, %v193_v9 }
  0x2b   :  { %98 = vmatmul.f32.gmra.mxu0 %v54_v12  ;;  %110 = vmatmul.f32.gmra.mxu1 %v58_v13  ;;  %v795_v11 = vsel %vm195_vm1, %v584_v6, %v194_v10 }
  0x2c   :  { %122 = vmatmul.f32.gmra.mxu2 %v62_v14  ;;  %134 = vmatmul.f32.gmra.mxu3 %v66_v15 }
  0x33   :  { %101 = vmatmul.f32.gmra.mxu0 %v55_v16  ;;  %113 = vmatmul.f32.gmra.mxu1 %v59_v17 }
  0x34   :  { %125 = vmatmul.f32.gmra.mxu2 %v63_v18  ;;  %137 = vmatmul.f32.gmra.mxu3 %v67_v19 }
  0x98   :  { %v93_v21 = vpop.f32.mrf.mxu0  ;;  %v105_v22 = vpop.f32.mrf.mxu1 }
  0x99   :  { %v716_v23 = vadd.f32 %v713_v20, %v93_v21  ;;  %v719_v24 = vadd.f32 %v713_v20, %v105_v22 }
  0x9b   :  { %v154_v25 = vsel %vm141_vm0, %v719_v24, 0.0  ;;  %v142_v26 = vsel %vm141_vm0, %v716_v23, 0.0 }
  0x9c   :  { %155 = vadd.xlane.f32.xlu2 %v154_v25  ;;  %143 = vadd.xlane.f32.xlu0 %v142_v26 }
  0x9f   :  { %v117_v27 = vpop.f32.mrf.mxu2  ;;  %v129_v28 = vpop.f32.mrf.mxu3 }
  0xa0   :  { %v726_v29 = vadd.f32 %v713_v20, %v117_v27  ;;  %v729_v30 = vadd.f32 %v713_v20, %v129_v28  ;;  %v96_v31 = vpop.f32.mrf.mxu0  ;;  %v108_v33 = vpop.f32.mrf.mxu1 }
  0xa1   :  { %v736_v35 = vadd.f32 %v713_v20, %v108_v33  ;;  %v739_v36 = vadd.f32 %v713_v20, %v96_v31 }
  0xa2   :  { %v166_v32 = vsel %vm141_vm0, %v726_v29, 0.0  ;;  %v178_v34 = vsel %vm141_vm0, %v729_v30, 0.0 }
  0xa3   :  { %v157_v40 = vsel %vm141_vm0, %v736_v35, 0.0  ;;  %v145_v43 = vsel %vm141_vm0, %v739_v36, 0.0 }
  0xa4   :  { %167 = vadd.xlane.f32.xlu2 %v166_v32  ;;  %179 = vadd.xlane.f32.xlu0 %v178_v34 }
  0xa7   :  { %v120_v37 = vpop.f32.mrf.mxu2  ;;  %v132_v38 = vpop.f32.mrf.mxu3 }
  0xa8   :  { %v742_v39 = vadd.f32 %v713_v20, %v132_v38  ;;  %v99_v41 = vpop.f32.mrf.mxu0  ;;  %v754_v45 = vadd.f32 %v713_v20, %v120_v37  ;;  %v111_v49 = vpop.f32.mrf.mxu1 }
  0xa9   :  { %v751_v44 = vadd.f32 %v713_v20, %v99_v41  ;;  %v764_v52 = vadd.f32 %v713_v20, %v111_v49 }
  0xaa   :  { %v181_v42 = vsel %vm141_vm0, %v742_v39, 0.0  ;;  %v169_v50 = vsel %vm141_vm0, %v754_v45, 0.0 }
  0xab   :  { %182 = vadd.xlane.f32.xlu1 %v181_v42  ;;  %v148_v47 = vsel %vm141_vm0, %v751_v44, 0.0  ;;  %v160_v56 = vsel %vm141_vm0, %v764_v52, 0.0 }
  0xac   :  { %158 = vadd.xlane.f32.xlu2 %v157_v40  ;;  %146 = vadd.xlane.f32.xlu0 %v145_v43 }
  0xaf   :  { %v123_v46 = vpop.f32.mrf.mxu2  ;;  %v135_v48 = vpop.f32.mrf.mxu3 }
  0xb0   :  { %v761_v51 = vadd.f32 %v713_v20, %v123_v46  ;;  %v102_v57 = vpop.f32.mrf.mxu0  ;;  %v776_v60 = vadd.f32 %v713_v20, %v135_v48  ;;  %v114_v2 = vpop.f32.mrf.mxu1 }
  0xb1   :  { %v779_v61 = vadd.f32 %v713_v20, %v102_v57  ;;  %v791_v3 = vadd.f32 %v713_v20, %v114_v2 }
  0xb2   :  { %v172_v55 = vsel %vm141_vm0, %v761_v51, 0.0  ;;  %v184_v63 = vsel %vm141_vm0, %v776_v60, 0.0 }
  0xb3   :  { %149 = vadd.xlane.f32.xlu1 %v148_v47  ;;  %v151_v0 = vsel %vm141_vm0, %v779_v61, 0.0  ;;  %v163_v4 = vsel %vm141_vm0, %v791_v3, 0.0 }
  0xb4   :  { %170 = vadd.xlane.f32.xlu0 %v169_v50 }
  0xb7   :  { %v126_v53 = vpop.f32.mrf.mxu2  ;;  %v138_v59 = vpop.f32.mrf.mxu3 }
  0xb8   :  { %v767_v54 = vadd.f32 %v713_v20, %v126_v53  ;;  %v782_v62 = vadd.f32 %v713_v20, %v138_v59 }
  0xba   :  { %v175_v58 = vsel %vm141_vm0, %v767_v54, 0.0  ;;  %v187_v1 = vsel %vm141_vm0, %v782_v62, 0.0 }
  0xbb   :  { %176 = vadd.xlane.f32.xlu2 %v175_v58  ;;  %173 = vadd.xlane.f32.xlu1 %v172_v55 }
  0xbc   :  { %161 = vadd.xlane.f32.xlu0 %v160_v56 }
  0xc3   :  { %185 = vadd.xlane.f32.xlu2 %v184_v63  ;;  %152 = vadd.xlane.f32.xlu1 %v151_v0 }
  0xc4   :  { %188 = vadd.xlane.f32.xlu0 %v187_v1 }
  0xcb   :  { %164 = vadd.xlane.f32.xlu1 %v163_v4 }
 0x10f   :  { %v156_v12 = vpop.xlane.xlu2 %155  ;;  %v144_v13 = vpop.xlane.xlu0 %143 }
 0x110   :  { %v201_v14 = vmul.f32 %v795_v11, %v156_v12  ;;  %v197_v15 = vmul.f32 %v795_v11, %v144_v13 }
 0x112   :  { %v800_v16 = vsub.f32 %v719_v24, %v201_v14  ;;  %v803_v17 = vsub.f32 %v716_v23, %v197_v15 }
 0x114   :  { %v233_v18 = vmul.f32 %v800_v16, %v800_v16  ;;  %v229_v19 = vmul.f32 %v803_v17, %v803_v17 }
 0x116   :  { %v257_v20 = vsel %vm141_vm0, %v233_v18, 0.0  ;;  %v245_v21 = vsel %vm141_vm0, %v229_v19, 0.0 }
 0x117   :  { %258 = vadd.xlane.f32.xlu2 %v257_v20  ;;  %v168_v22 = vpop.xlane.xlu2 %167  ;;  %246 = vadd.xlane.f32.xlu1 %v245_v21  ;;  %v180_v25 = vpop.xlane.xlu0 %179 }
 0x118   :  { %v205_v24 = vmul.f32 %v795_v11, %v168_v22  ;;  %v209_v26 = vmul.f32 %v795_v11, %v180_v25 }
 0x11a   :  { %v814_v23 = vsub.f32 %v726_v29, %v205_v24  ;;  %v817_v27 = vsub.f32 %v729_v30, %v209_v26 }
 0x11c   :  { %v237_v28 = vmul.f32 %v814_v23, %v814_v23  ;;  %v241_v31 = vmul.f32 %v817_v27, %v817_v27 }
 0x11e   :  { %v823_v32 = vpop.xlane.xlu1 %182  ;;  %v269_v33 = vsel %vm141_vm0, %v237_v28, 0.0  ;;  %v281_v34 = vsel %vm141_vm0, %v241_v31, 0.0 }
 0x11f   :  { %v159_v37 = vpop.xlane.xlu2 %158  ;;  %270 = vadd.xlane.f32.xlu0 %v269_v33  ;;  %282 = vadd.xlane.f32.xlu1 %v281_v34  ;;  %v147_v29 = vpop.xlane.xlu0 %146 }
 0x120   :  { %v202_v38 = vmul.f32 %v795_v11, %v159_v37  ;;  %v198_v30 = vmul.f32 %v795_v11, %v147_v29 }
 0x122   :  { %v830_v40 = vsub.f32 %v736_v35, %v202_v38  ;;  %v833_v41 = vsub.f32 %v739_v36, %v198_v30 }
 0x124   :  { %v234_v42 = vmul.f32 %v830_v40, %v830_v40  ;;  %v230_v43 = vmul.f32 %v833_v41, %v833_v41 }
 0x126   :  { %v150_v46 = vpop.xlane.xlu1 %149  ;;  %v260_v47 = vsel %vm141_vm0, %v234_v42, 0.0  ;;  %v248_v48 = vsel %vm141_vm0, %v230_v43, 0.0 }
 0x127   :  { %v199_v49 = vmul.f32 %v795_v11, %v150_v46  ;;  %261 = vadd.xlane.f32.xlu0 %v260_v47  ;;  %249 = vadd.xlane.f32.xlu2 %v248_v48  ;;  %v171_v35 = vpop.xlane.xlu0 %170 }
 0x128   :  { %v206_v50 = vmul.f32 %v795_v11, %v171_v35 }
 0x129   :  { %v844_v36 = vsub.f32 %v751_v44, %v199_v49 }
 0x12a   :  { %v847_v53 = vsub.f32 %v754_v45, %v206_v50 }
 0x12b   :  { %v231_v55 = vmul.f32 %v844_v36, %v844_v36 }
 0x12c   :  { %v238_v56 = vmul.f32 %v847_v53, %v847_v53 }
 0x12d   :  { %v251_v59 = vsel %vm141_vm0, %v231_v55, 0.0 }
 0x12e   :  { %v177_v57 = vpop.xlane.xlu2 %176  ;;  %v174_v58 = vpop.xlane.xlu1 %173  ;;  %v272_v63 = vsel %vm141_vm0, %v238_v56, 0.0 }
 0x12f   :  { %v208_v0 = vmul.f32 %v795_v11, %v177_v57  ;;  %v207_v44 = vmul.f32 %v795_v11, %v174_v58  ;;  %252 = vadd.xlane.f32.xlu0 %v251_v59  ;;  %273 = vadd.xlane.f32.xlu1 %v272_v63  ;;  %v162_v45 = vpop.xlane.xlu0 %161 }
 0x130   :  { %v203_v1 = vmul.f32 %v795_v11, %v162_v45 }
 0x131   :  { %v859_v2 = vsub.f32 %v767_v54, %v208_v0  ;;  %v862_v4 = vsub.f32 %v761_v51, %v207_v44 }
 0x132   :  { %v865_v5 = vsub.f32 %v764_v52, %v203_v1 }
 0x133   :  { %v239_v6 = vmul.f32 %v862_v4, %v862_v4  ;;  %v240_v7 = vmul.f32 %v859_v2, %v859_v2 }
 0x134   :  { %v235_v8 = vmul.f32 %v865_v5, %v865_v5 }
 0x135   :  { %v275_v9 = vsel %vm141_vm0, %v239_v6, 0.0  ;;  %v278_v51 = vsel %vm141_vm0, %v240_v7, 0.0 }
 0x136   :  { %v186_v10 = vpop.xlane.xlu2 %185  ;;  %v153_v54 = vpop.xlane.xlu1 %152  ;;  %276 = vadd.xlane.f32.xlu2 %v275_v9  ;;  %v263_v12 = vsel %vm141_vm0, %v235_v8, 0.0 }
 0x137   :  { %v211_v52 = vmul.f32 %v795_v11, %v186_v10  ;;  %v200_v13 = vmul.f32 %v795_v11, %v153_v54  ;;  %279 = vadd.xlane.f32.xlu0 %v278_v51  ;;  %264 = vadd.xlane.f32.xlu1 %v263_v12  ;;  %v189_v14 = vpop.xlane.xlu0 %188 }
 0x138   :  { %v212_v19 = vmul.f32 %v795_v11, %v189_v14  ;;  %v932_v14 = vld [vmem:[%s1140_s3] ss:$0 sm:$0xff] }
 0x139   :  { %v879_v15 = vsub.f32 %v776_v60, %v211_v52  ;;  %v882_v18 = vsub.f32 %v779_v61, %v200_v13  ;;  %v210_v61 = vmul.f32 %v795_v11, %v823_v32 }
 0x13a   :  { %v890_v22 = vsub.f32 %v782_v62, %v212_v19 }
 0x13b   :  { %v243_v20 = vmul.f32 %v879_v15, %v879_v15  ;;  %v232_v21 = vmul.f32 %v882_v18, %v882_v18  ;;  %v905_v33 = vsub.f32 %v742_v39, %v210_v61 }
 0x13c   :  { %v244_v31 = vmul.f32 %v890_v22, %v890_v22 }
 0x13d   :  { %v287_v24 = vsel %vm141_vm0, %v243_v20, 0.0  ;;  %v254_v60 = vsel %vm141_vm0, %v232_v21, 0.0  ;;  %v242_v32 = vmul.f32 %v905_v33, %v905_v33 }
 0x13e   :  { %v165_v25 = vpop.xlane.xlu1 %164  ;;  %v290_v37 = vsel %vm141_vm0, %v244_v31, 0.0 }
 0x13f   :  { %v204_v26 = vmul.f32 %v795_v11, %v165_v25  ;;  %288 = vadd.xlane.f32.xlu0 %v287_v24  ;;  %255 = vadd.xlane.f32.xlu1 %v254_v60  ;;  %v940_v24 = vld [vmem:[%s1141_s4] ss:$0 sm:$0xff] }
 0x141   :  { %v898_v28 = vsub.f32 %v791_v3, %v204_v26  ;;  %v284_v3 = vsel %vm141_vm0, %v242_v32, 0.0 }
 0x143   :  { %v236_v62 = vmul.f32 %v898_v28, %v898_v28 }
 0x145   :  { %v266_v34 = vsel %vm141_vm0, %v236_v62, 0.0 }
 0x146   :  { %267 = vadd.xlane.f32.xlu2 %v266_v34 }
 0x147   :  { %291 = vadd.xlane.f32.xlu1 %v290_v37 }
 0x14e   :  { %285 = vadd.xlane.f32.xlu2 %v284_v3 }
 0x18a   :  { %v259_v29 = vpop.xlane.xlu2 %258  ;;  %v247_v38 = vpop.xlane.xlu1 %246 }
 0x18b   :  { %v297_v30 = vmul.f32 %v259_v29, %v795_v11  ;;  %v293_v42 = vmul.f32 %v247_v38, %v795_v11 }
 0x18d   :  { %v313_v39 = vadd.f32 1e-05, %v297_v30  ;;  %v309_v43 = vadd.f32 1e-05, %v293_v42 }
 0x18f   :  { %585 = vrsqrt.f32 %v313_v39  ;;  %vm371_vm4 = vweird.f32 %v313_v39  ;;  %vm331_vm6 = vweird.f32 %v309_v43 }
 0x190   :  { %587 = vrsqrt.f32 %v309_v43 }
 0x192   :  { %v283_v46 = vpop.xlane.xlu1 %282  ;;  %v271_v47 = vpop.xlane.xlu0 %270 }
 0x193   :  { %v305_v48 = vmul.f32 %v283_v46, %v795_v11  ;;  %v301_v49 = vmul.f32 %v271_v47, %v795_v11 }
 0x195   :  { %v586_v35 = vpop.eup %585  ;;  %v916_v50 = vadd.f32 1e-05, %v305_v48  ;;  %v918_v55 = vadd.f32 1e-05, %v301_v49 }
 0x196   :  { %v588_v56 = vpop.eup %587  ;;  %v366_v57 = vmul.f32 %v586_v35, %v313_v39  ;;  %vm372_vm2 = vweird.f32 %v586_v35 }
 0x197   :  { %v326_v58 = vmul.f32 %v588_v56, %v309_v43  ;;  %589 = vrsqrt.f32 %v916_v50  ;;  %vm332_vm3 = vweird.f32 %v588_v56  ;;  %vm373_vm5 = vmor %vm371_vm4, %vm372_vm2  ;;  %vm451_vm10 = vweird.f32 %v916_v50 }
 0x198   :  { %v367_v59 = vmul.f32 %v586_v35, %v366_v57  ;;  %591 = vrsqrt.f32 %v918_v55  ;;  %vm333_vm7 = vmor %vm331_vm6, %vm332_vm3  ;;  %vm411_vm12 = vweird.f32 %v918_v55 }
 0x199   :  { %v327_v63 = vmul.f32 %v588_v56, %v326_v58 }
 0x19a   :  { %v368_v0 = vmul.f32 0.5, %v367_v59  ;;  %v250_v44 = vpop.xlane.xlu2 %249  ;;  %v262_v45 = vpop.xlane.xlu0 %261 }
 0x19b   :  { %v328_v1 = vmul.f32 0.5, %v327_v63  ;;  %v294_v6 = vmul.f32 %v250_v44, %v795_v11  ;;  %v298_v7 = vmul.f32 %v262_v45, %v795_v11 }
 0x19c   :  { %v369_v8 = vsub.f32 1.5, %v368_v0 }
 0x19d   :  { %v590_v9 = vpop.eup %589  ;;  %v329_v10 = vsub.f32 1.5, %v328_v1  ;;  %v924_v54 = vadd.f32 1e-05, %v294_v6  ;;  %v926_v51 = vadd.f32 1e-05, %v298_v7 }
 0x19e   :  { %v592_v12 = vpop.eup %591  ;;  %v370_v52 = vmul.f32 %v586_v35, %v369_v8  ;;  %v446_v13 = vmul.f32 %v590_v9, %v916_v50  ;;  %vm452_vm8 = vweird.f32 %v590_v9 }
 0x19f   :  { %v330_v19 = vmul.f32 %v588_v56, %v329_v10  ;;  %v406_v20 = vmul.f32 %v592_v12, %v918_v55  ;;  %593 = vrsqrt.f32 %v924_v54  ;;  %vm412_vm9 = vweird.f32 %v592_v12  ;;  %vm453_vm11 = vmor %vm451_vm10, %vm452_vm8 }
 0x1a0   :  { %v374_v21 = vsel %vm373_vm5, %v586_v35, %v370_v52  ;;  %v447_v25 = vmul.f32 %v590_v9, %v446_v13  ;;  %595 = vrsqrt.f32 %v926_v51  ;;  %vm413_vm13 = vmor %vm411_vm12, %vm412_vm9  ;;  %vm341_vm14 = vweird.f32 %v924_v54 }
 0x1a1   :  { %v489_v60 = vmul.f32 %v374_v21, %v800_v16  ;;  %v334_v26 = vsel %vm333_vm7, %v588_v56, %v330_v19  ;;  %v407_v61 = vmul.f32 %v592_v12, %v406_v20  ;;  %vm381_vm3 = vweird.f32 %v926_v51 }
 0x1a2   :  { %v485_v31 = vmul.f32 %v334_v26, %v803_v17  ;;  %v448_v62 = vmul.f32 0.5, %v447_v25  ;;  %v274_v34 = vpop.xlane.xlu1 %273  ;;  %v253_v37 = vpop.xlane.xlu0 %252 }
 0x1a3   :  { %v509_v32 = vmul.f32 %v932_v14, %v489_v60  ;;  %v408_v3 = vmul.f32 0.5, %v407_v61  ;;  %v302_v29 = vmul.f32 %v274_v34, %v795_v11  ;;  %v295_v38 = vmul.f32 %v253_v37, %v795_v11 }
 0x1a4   :  { %v505_v30 = vmul.f32 %v932_v14, %v485_v31  ;;  %v449_v42 = vsub.f32 1.5, %v448_v62 }
 0x1a5   :  { %v594_v16 = vpop.eup %593  ;;  %v529_v39 = vadd.f32 %v940_v24, %v509_v32  ;;  %v409_v43 = vsub.f32 1.5, %v408_v3  ;;  %v949_v17 = vadd.f32 1e-05, %v302_v29  ;;  %v951_v46 = vadd.f32 1e-05, %v295_v38 }
 0x1a6   :  { %v596_v47 = vpop.eup %595  ;;  %v525_v48 = vadd.f32 %v940_v24, %v505_v30  ;;  %v450_v49 = vmul.f32 %v590_v9, %v449_v42  ;;  %v336_v35 = vmul.f32 %v594_v16, %v924_v54  ;;  %vm342_vm15 = vweird.f32 %v594_v16 }
 0x1a7   :  { %545 = vst.msk [vmem:[%s1142_s5 + $0x20] sm:$0xff] %vm141_vm0, %v529_v39  ;;  %v410_v56 = vmul.f32 %v592_v12, %v409_v43  ;;  %v376_v57 = vmul.f32 %v596_v47, %v926_v51  ;;  %597 = vrsqrt.f32 %v949_v17  ;;  %vm382_vm1 = vweird.f32 %v596_v47  ;;  %vm343_vm2 = vmor %vm341_vm14, %vm342_vm15 }
 0x1a8   :  { %541 = vst.msk [vmem:[%s1142_s5] sm:$0xff] %vm141_vm0, %v525_v48  ;;  %v454_v50 = vsel %vm453_vm11, %v590_v9, %v450_v49  ;;  %v337_v58 = vmul.f32 %v594_v16, %v336_v35  ;;  %599 = vrsqrt.f32 %v951_v46  ;;  %vm383_vm4 = vmor %vm381_vm3, %vm382_vm1  ;;  %vm421_vm7 = vweird.f32 %v949_v17 }
 0x1a9   :  { %v497_v59 = vmul.f32 %v454_v50, %v817_v27  ;;  %v414_v63 = vsel %vm413_vm13, %v592_v12, %v410_v56  ;;  %v377_v0 = vmul.f32 %v596_v47, %v376_v57  ;;  %v277_v55 = vpop.xlane.xlu2 %276  ;;  %vm351_vm9 = vweird.f32 %v951_v46 }
 0x1aa   :  { %v493_v44 = vmul.f32 %v414_v63, %v814_v23  ;;  %v338_v45 = vmul.f32 0.5, %v337_v58  ;;  %v303_v1 = vmul.f32 %v277_v55, %v795_v11  ;;  %v265_v6 = vpop.xlane.xlu1 %264  ;;  %v280_v7 = vpop.xlane.xlu0 %279 }
 0x1ab   :  { %v517_v8 = vmul.f32 %v932_v14, %v497_v59  ;;  %v378_v9 = vmul.f32 0.5, %v377_v0  ;;  %v299_v10 = vmul.f32 %v265_v6, %v795_v11  ;;  %v304_v52 = vmul.f32 %v280_v7, %v795_v11 }
 0x1ac   :  { %v513_v27 = vmul.f32 %v932_v14, %v493_v44  ;;  %v339_v12 = vsub.f32 1.5, %v338_v45  ;;  %v977_v13 = vadd.f32 1e-05, %v303_v1 }
 0x1ad   :  { %v598_v23 = vpop.eup %597  ;;  %v537_v19 = vadd.f32 %v940_v24, %v517_v8  ;;  %v379_v20 = vsub.f32 1.5, %v378_v9  ;;  %v980_v21 = vadd.f32 1e-05, %v299_v10  ;;  %v984_v31 = vadd.f32 1e-05, %v304_v52 }
 0x1ae   :  { %v600_v25 = vpop.eup %599  ;;  %v533_v60 = vadd.f32 %v940_v24, %v513_v27  ;;  %v340_v26 = vmul.f32 %v594_v16, %v339_v12  ;;  %v416_v61 = vmul.f32 %v598_v23, %v949_v17  ;;  %601 = vrsqrt.f32 %v977_v13 }
 0x1af   :  { %553 = vst.msk [vmem:[%s1142_s5 + $0x60] sm:$0xff] %vm141_vm0, %v537_v19  ;;  %v380_v62 = vmul.f32 %v596_v47, %v379_v20  ;;  %v346_v34 = vmul.f32 %v600_v25, %v951_v46  ;;  %603 = vrsqrt.f32 %v980_v21  ;;  %vm422_vm5 = vweird.f32 %v598_v23 }
 0x1b0   :  { %549 = vst.msk [vmem:[%s1142_s5 + $0x40] sm:$0xff] %vm141_vm0, %v533_v60  ;;  %v344_v37 = vsel %vm343_vm2, %v594_v16, %v340_v26  ;;  %v417_v32 = vmul.f32 %v598_v23, %v416_v61  ;;  %605 = vrsqrt.f32 %v984_v31  ;;  %vm352_vm6 = vweird.f32 %v600_v25  ;;  %vm423_vm8 = vmor %vm421_vm7, %vm422_vm5 }
 0x1b1   :  { %v486_v54 = vmul.f32 %v344_v37, %v833_v41  ;;  %v384_v3 = vsel %vm383_vm4, %v596_v47, %v380_v62  ;;  %v347_v29 = vmul.f32 %v600_v25, %v346_v34  ;;  %vm353_vm10 = vmor %vm351_vm9, %vm352_vm6  ;;  %vm431_vm11 = vweird.f32 %v977_v13 }
 0x1b2   :  { %v490_v51 = vmul.f32 %v384_v3, %v830_v40  ;;  %v418_v38 = vmul.f32 0.5, %v417_v32  ;;  %v256_v30 = vpop.xlane.xlu1 %255  ;;  %v289_v42 = vpop.xlane.xlu0 %288  ;;  %vm391_vm12 = vweird.f32 %v980_v21  ;;  %vm441_vm3 = vweird.f32 %v984_v31 }
 0x1b3   :  { %v506_v39 = vmul.f32 %v932_v14, %v486_v54  ;;  %v348_v43 = vmul.f32 0.5, %v347_v29  ;;  %v296_v16 = vmul.f32 %v256_v30, %v795_v11  ;;  %v307_v48 = vmul.f32 %v289_v42, %v795_v11 }
 0x1b4   :  { %v510_v49 = vmul.f32 %v932_v14, %v490_v51  ;;  %v419_v35 = vsub.f32 1.5, %v418_v38  ;;  %v1008_v41 = vpop.eup %601 }
 0x1b5   :  { %v526_v40 = vadd.f32 %v940_v24, %v506_v39  ;;  %v349_v47 = vsub.f32 1.5, %v348_v43  ;;  %v1011_v56 = vadd.f32 1e-05, %v296_v16  ;;  %v1013_v57 = vadd.f32 1e-05, %v307_v48  ;;  %v1015_v50 = vpop.eup %603 }
 0x1b6   :  { %v530_v58 = vadd.f32 %v940_v24, %v510_v49  ;;  %v420_v59 = vmul.f32 %v598_v23, %v419_v35  ;;  %v426_v63 = vmul.f32 %v1008_v41, %v977_v13  ;;  %v386_v55 = vmul.f32 %v1015_v50, %v980_v21  ;;  %v606_v44 = vpop.eup %605 }
 0x1b7   :  { %542 = vst.msk [vmem:[%s1142_s5 + $0x8] sm:$0xff] %vm141_vm0, %v526_v40  ;;  %v350_v0 = vmul.f32 %v600_v25, %v349_v47  ;;  %607 = vrsqrt.f32 %v1011_v56  ;;  %v436_v7 = vmul.f32 %v606_v44, %v984_v31  ;;  %vm432_vm13 = vweird.f32 %v1008_v41 }
 0x1b8   :  { %546 = vst.msk [vmem:[%s1142_s5 + $0x28] sm:$0xff] %vm141_vm0, %v530_v58  ;;  %v424_v17 = vsel %vm423_vm8, %v598_v23, %v420_v59  ;;  %v427_v45 = vmul.f32 %v1008_v41, %v426_v63  ;;  %609 = vrsqrt.f32 %v1013_v57  ;;  %v387_v6 = vmul.f32 %v1015_v50, %v386_v55  ;;  %vm433_vm15 = vmor %vm431_vm11, %vm432_vm13 }
 0x1b9   :  { %v494_v46 = vmul.f32 %v424_v17, %v847_v53  ;;  %v354_v1 = vsel %vm353_vm10, %v600_v25, %v350_v0  ;;  %v268_v8 = vpop.xlane.xlu2 %267  ;;  %v437_v12 = vmul.f32 %v606_v44, %v436_v7  ;;  %vm392_vm14 = vweird.f32 %v1015_v50 }
 0x1ba   :  { %v487_v9 = vmul.f32 %v354_v1, %v844_v36  ;;  %v428_v10 = vmul.f32 0.5, %v427_v45  ;;  %v388_v27 = vmul.f32 0.5, %v387_v6  ;;  %v300_v23 = vmul.f32 %v268_v8, %v795_v11  ;;  %v292_v53 = vpop.xlane.xlu1 %291  ;;  %vm393_vm2 = vmor %vm391_vm12, %vm392_vm14 }
 0x1bb   :  { %v514_v52 = vmul.f32 %v932_v14, %v494_v46  ;;  %v438_v26 = vmul.f32 0.5, %v437_v12  ;;  %v308_v54 = vmul.f32 %v292_v53, %v795_v11  ;;  %vm442_vm1 = vweird.f32 %v606_v44 }
 0x1bc   :  { %v507_v19 = vmul.f32 %v932_v14, %v487_v9  ;;  %v429_v20 = vsub.f32 1.5, %v428_v10  ;;  %v389_v60 = vsub.f32 1.5, %v388_v27  ;;  %v1048_v61 = vadd.f32 1e-05, %v300_v23  ;;  %vm443_vm4 = vmor %vm441_vm3, %vm442_vm1 }
 0x1bd   :  { %v608_v36 = vpop.eup %607  ;;  %v534_v25 = vadd.f32 %v940_v24, %v514_v52  ;;  %v439_v29 = vsub.f32 1.5, %v438_v26  ;;  %v324_v35 = vadd.f32 1e-05, %v308_v54  ;;  %vm361_vm7 = vweird.f32 %v1011_v56 }
 0x1be   :  { %v610_v62 = vpop.eup %609  ;;  %v527_v34 = vadd.f32 %v940_v24, %v507_v19  ;;  %v430_v37 = vmul.f32 %v1008_v41, %v429_v20  ;;  %v356_v32 = vmul.f32 %v608_v36, %v1011_v56  ;;  %v390_v3 = vmul.f32 %v1015_v50, %v389_v60 }
 0x1bf   :  { %550 = vst.msk [vmem:[%s1142_s5 + $0x48] sm:$0xff] %vm141_vm0, %v534_v25  ;;  %v466_v51 = vmul.f32 %v610_v62, %v1013_v57  ;;  %611 = vrsqrt.f32 %v1048_v61  ;;  %v440_v39 = vmul.f32 %v606_v44, %v439_v29  ;;  %vm362_vm5 = vweird.f32 %v608_v36 }
 0x1c0   :  { %543 = vst.msk [vmem:[%s1142_s5 + $0x10] sm:$0xff] %vm141_vm0, %v527_v34  ;;  %v434_v38 = vsel %vm433_vm15, %v1008_v41, %v430_v37  ;;  %v357_v13 = vmul.f32 %v608_v36, %v356_v32  ;;  %v394_v42 = vsel %vm393_vm2, %v1015_v50, %v390_v3  ;;  %613 = vrsqrt.f32 %v324_v35  ;;  %vm363_vm8 = vmor %vm361_vm7, %vm362_vm5 }
 0x1c1   :  { %v495_v30 = vmul.f32 %v434_v38, %v862_v4  ;;  %v467_v43 = vmul.f32 %v610_v62, %v466_v51  ;;  %v286_v16 = vpop.xlane.xlu2 %285  ;;  %v491_v48 = vmul.f32 %v394_v42, %v865_v5  ;;  %v444_v31 = vsel %vm443_vm4, %v606_v44, %v440_v39 }
 0x1c2   :  { %v358_v49 = vmul.f32 0.5, %v357_v13  ;;  %v306_v21 = vmul.f32 %v286_v16, %v795_v11  ;;  %v496_v4 = vmul.f32 %v444_v31, %v859_v2  ;;  %vm472_vm6 = vweird.f32 %v610_v62 }
 0x1c3   :  { %v515_v41 = vmul.f32 %v932_v14, %v495_v30  ;;  %v468_v40 = vmul.f32 0.5, %v467_v43  ;;  %v511_v47 = vmul.f32 %v932_v14, %v491_v48  ;;  %vm471_vm9 = vweird.f32 %v1013_v57 }
 0x1c4   :  { %v359_v50 = vsub.f32 1.5, %v358_v49  ;;  %v322_v5 = vadd.f32 1e-05, %v306_v21  ;;  %v516_v11 = vmul.f32 %v932_v14, %v496_v4  ;;  %vm473_vm10 = vmor %vm471_vm9, %vm472_vm6  ;;  %vm401_vm12 = vweird.f32 %v1048_v61 }
 0x1c5   :  { %v535_v58 = vadd.f32 %v940_v24, %v515_v41  ;;  %v469_v59 = vsub.f32 1.5, %v468_v40  ;;  %v612_v63 = vpop.eup %611  ;;  %v531_v0 = vadd.f32 %v940_v24, %v511_v47  ;;  %vm481_vm15 = vweird.f32 %v324_v35 }
 0x1c6   :  { %v360_v55 = vmul.f32 %v608_v36, %v359_v50  ;;  %v396_v44 = vmul.f32 %v612_v63, %v1048_v61  ;;  %615 = vrsqrt.f32 %v322_v5  ;;  %v536_v56 = vadd.f32 %v940_v24, %v516_v11  ;;  %v614_v6 = vpop.eup %613 }
 0x1c7   :  { %551 = vst.msk [vmem:[%s1142_s5 + $0x50] sm:$0xff] %vm141_vm0, %v535_v58  ;;  %v470_v2 = vmul.f32 %v610_v62, %v469_v59  ;;  %v476_v9 = vmul.f32 %v614_v6, %v324_v35  ;;  %vm402_vm11 = vweird.f32 %v612_v63  ;;  %vm482_vm14 = vweird.f32 %v614_v6 }
 0x1c8   :  { %547 = vst.msk [vmem:[%s1142_s5 + $0x30] sm:$0xff] %vm141_vm0, %v531_v0  ;;  %v364_v17 = vsel %vm363_vm8, %v608_v36, %v360_v55  ;;  %v397_v1 = vmul.f32 %v612_v63, %v396_v44  ;;  %vm403_vm13 = vmor %vm401_vm12, %vm402_vm11  ;;  %vm461_vm3 = vweird.f32 %v322_v5 }
 0x1c9   :  { %v488_v45 = vmul.f32 %v364_v17, %v882_v18  ;;  %v474_v46 = vsel %vm473_vm10, %v610_v62, %v470_v2  ;;  %552 = vst.msk [vmem:[%s1142_s5 + $0x58] sm:$0xff] %vm141_vm0, %v536_v56  ;;  %v477_v12 = vmul.f32 %v614_v6, %v476_v9  ;;  %vm483_vm1 = vmor %vm481_vm15, %vm482_vm14 }
 0x1ca   :  { %v499_v57 = vmul.f32 %v474_v46, %v879_v15  ;;  %v398_v8 = vmul.f32 0.5, %v397_v1 }
 0x1cb   :  { %v508_v7 = vmul.f32 %v932_v14, %v488_v45  ;;  %v478_v19 = vmul.f32 0.5, %v477_v12 }
 0x1cc   :  { %v519_v10 = vmul.f32 %v932_v14, %v499_v57  ;;  %v616_v52 = vpop.eup %615  ;;  %v399_v18 = vsub.f32 1.5, %v398_v8 }
 0x1cd   :  { %v528_v27 = vadd.f32 %v940_v24, %v508_v7  ;;  %v456_v53 = vmul.f32 %v616_v52, %v322_v5  ;;  %v479_v25 = vsub.f32 1.5, %v478_v19  ;;  %vm462_vm2 = vweird.f32 %v616_v52 }
 0x1ce   :  { %v539_v23 = vadd.f32 %v940_v24, %v519_v10  ;;  %v400_v15 = vmul.f32 %v612_v63, %v399_v18  ;;  %vm463_vm4 = vmor %vm461_vm3, %vm462_vm2 }
 0x1cf   :  { %544 = vst.msk [vmem:[%s1142_s5 + $0x18] sm:$0xff] %vm141_vm0, %v528_v27  ;;  %v457_v20 = vmul.f32 %v616_v52, %v456_v53  ;;  %v480_v62 = vmul.f32 %v614_v6, %v479_v25 }
 0x1d0   :  { %555 = vst.msk [vmem:[%s1142_s5 + $0x70] sm:$0xff] %vm141_vm0, %v539_v23  ;;  %v404_v36 = vsel %vm403_vm13, %v612_v63, %v400_v15 }
 0x1d1   :  { %v492_v60 = vmul.f32 %v404_v36, %v898_v28  ;;  %v458_v26 = vmul.f32 0.5, %v457_v20  ;;  %v484_v37 = vsel %vm483_vm1, %v614_v6, %v480_v62 }
 0x1d2   :  { %v500_v54 = vmul.f32 %v484_v37, %v890_v22 }
 0x1d3   :  { %v512_v34 = vmul.f32 %v932_v14, %v492_v60  ;;  %v459_v61 = vsub.f32 1.5, %v458_v26 }
 0x1d4   :  { %v520_v28 = vmul.f32 %v932_v14, %v500_v54 }
 0x1d5   :  { %v532_v32 = vadd.f32 %v940_v24, %v512_v34  ;;  %v460_v3 = vmul.f32 %v616_v52, %v459_v61 }
 0x1d6   :  { %v540_v38 = vadd.f32 %v940_v24, %v520_v28 }
 0x1d7   :  { %548 = vst.msk [vmem:[%s1142_s5 + $0x38] sm:$0xff] %vm141_vm0, %v532_v32  ;;  %v464_v29 = vsel %vm463_vm4, %v616_v52, %v460_v3 }
 0x1d8   :  { %v498_v51 = vmul.f32 %v464_v29, %v905_v33  ;;  %556 = vst.msk [vmem:[%s1142_s5 + $0x78] sm:$0xff] %vm141_vm0, %v540_v38 }
 0x1da   :  { %v518_v13 = vmul.f32 %v932_v14, %v498_v51 }
 0x1dc   :  { %v538_v22 = vadd.f32 %v940_v24, %v518_v13 }
 0x1de   :  { %554 = vst.msk [vmem:[%s1142_s5 + $0x68] sm:$0xff] %vm141_vm0, %v538_v22 }
 0x1df   :  { %561 = vsyncpa [#allocation3], 1 }
 0x1e0   :  { %562 = vsyncpa [#allocation5], 1 }

</bundles_post_ra>
